<compile_context>
chip_gen: v5e
topology: v5e:2x2
jax: 0.10.0
libtpu: 0.0.40
codegen_flags: <defaults>
</compile_context>

<pallas_src>
import numpy as np

import jax
import jax.numpy as jnp
from jax.experimental import pallas as pl
from jax.experimental.pallas import tpu as pltpu


_DEFAULT_BLOCK_BYTES = 2 * 1024 * 1024  # target bytes per input block (double-buffered)


def _butterfly_matrix(b, dtype):
    """(b, b) matrix M with s @ M = [pair-sums*0.5 | pair-diffs*0.5].

    For an interleaved row s (s[2k], s[2k+1] = even/odd spatial columns):
      (s @ M)[k]        = 0.5 * (s[2k] + s[2k+1])
      (s @ M)[b//2 + k] = 0.5 * (s[2k+1] - s[2k])
    Entries are 0 / +-0.5, exactly representable in f32/bf16.
    """
    b2 = b // 2
    m = np.zeros((b, b), np.float32)
    k = np.arange(b2)
    m[2 * k, k] = 0.5
    m[2 * k + 1, k] = 0.5
    m[2 * k, b2 + k] = -0.5
    m[2 * k + 1, b2 + k] = 0.5
    return jnp.asarray(m, dtype=dtype)


def _pick_chunk(w):
    """Largest even divisor of w that is <= 128 (one vreg lane group).

    Chunking the column butterfly keeps the MXU work O(T * W * chunk) instead of
    O(T * W^2), so the kernel stays HBM-bound even for wide images.
    """
    for b in range(min(w, 128), 1, -1):
        if w % b == 0 and b % 2 == 0:
            return b
    return 2


def _pick_row_tile(r, cap):
    """Largest row tile T with T | r and (T == r or T % 8 == 0), T <= cap (best effort)."""
    cap = max(1, min(cap, r))
    if cap >= r:
        return r
    for t in range(cap - (cap % 8), 0, -8):
        if r % t == 0:
            return t
    return r  # no legal smaller tile; fall back to the full extent


def _dwt_kernel(x_ref, m_ref, o_ref):
    # x_ref: (1, T, 2*W)   each row is [even spatial row (W) | odd spatial row (W)]
    # m_ref: (B, B)        constant column-pair butterfly matrix (B even, B | W)
    # o_ref: (1, 4, T, W2) subband planes in order [LL, HL, LH, HH]
    blk = x_ref[0]                      # (T, 2W)
    w = blk.shape[1] // 2
    b = m_ref.shape[0]
    b2 = b // 2
    n_chunks = w // b

    m = m_ref[...]
    # Exact f32 matmul path; for narrow dtypes the MXU is already exact
    # (bf16 x bf16 -> f32 accumulate).
    prec = jax.lax.Precision.HIGHEST if blk.dtype == jnp.float32 else None

    ll, hl, lh, hh = [], [], [], []
    for c in range(n_chunks):           # static unroll; W // B chunks of 128 lanes
        lo = c * b
        e = blk[:, lo:lo + b]            # even spatial rows, columns [lo, lo+b)
        o = blk[:, w + lo:w + lo + b]    # odd  spatial rows, columns [lo, lo+b)
        # Row-direction butterfly on the VPU (0.5 scaling is folded into M).
        s = e + o                        # interleaved 2*(x1+x2), 2*(x3+x4)
        d = o - e                        # interleaved 2*(x2-x1), 2*(x4-x3)
        # Column-direction deinterleave + butterfly on the (otherwise idle) MXU.
        sm = jnp.dot(s, m, precision=prec, preferred_element_type=jnp.float32)
        dm = jnp.dot(d, m, precision=prec, preferred_element_type=jnp.float32)
        ll.append(sm[:, :b2])
        hl.append(sm[:, b2:])
        lh.append(dm[:, :b2])
        hh.append(dm[:, b2:])

    def _cat(parts):
        return parts[0] if len(parts) == 1 else jnp.concatenate(parts, axis=-1)

    od = o_ref.dtype
    o_ref[0, 0] = _cat(ll).astype(od)    # LL
    o_ref[0, 1] = _cat(hl).astype(od)    # HL
    o_ref[0, 2] = _cat(lh).astype(od)    # LH
    o_ref[0, 3] = _cat(hh).astype(od)    # HH


def dwt(x, *, block_bytes=_DEFAULT_BLOCK_BYTES):
    """Pallas equivalent of DWT.forward / dwt_init.  x: (N, C, H, W) -> (N, 4C, H/2, W/2)."""
    n, c, h, w = x.shape
    assert h % 2 == 0 and w % 2 == 0, "DWT needs even spatial dims"
    h2, w2 = h // 2, w // 2
    r = c * h2                               # output rows per image (flattened C*H2)

    # FREE contiguous reshape: row (c*h2 + i) of `a` holds
    # [x[n, c, 2i, :] | x[n, c, 2i+1, :]]  (2*w values). No data movement / no copies.
    a = x.reshape(n, r, 2 * w)

    itemsize = jnp.dtype(x.dtype).itemsize
    cap = max(1, block_bytes // (2 * w * itemsize))
    t = _pick_row_tile(r, cap)               # rows per grid step (multiple of 8 or full)

    b = _pick_chunk(w)                        # column chunk for the MXU butterfly
    m = _butterfly_matrix(b, x.dtype)

    grid = (n, r // t)

    out = pl.pallas_call(
        _dwt_kernel,
        out_shape=jax.ShapeDtypeStruct((n, 4, r, w2), x.dtype),
        grid=grid,
        in_specs=[
            # Data block: last dim is the FULL 2*w extent (always legal, lane dense).
            pl.BlockSpec((1, t, 2 * w), lambda ni, ri: (ni, ri, 0)),
            # Constant butterfly matrix: same block every step -> fetched once.
            pl.BlockSpec((b, b), lambda ni, ri: (0, 0)),
        ],
        # Output block: last dim is the FULL w2 extent.
        out_specs=pl.BlockSpec((1, 4, t, w2), lambda ni, ri: (ni, 0, ri, 0)),
        compiler_params=pltpu.CompilerParams(
            dimension_semantics=("parallel", "parallel"),   # shardable across TCs
            vmem_limit_bytes=32 * 1024 * 1024,              # explicit; safe on v5e/v6e/v7x
        ),
    )(a, m)

    # (N, 4, C*H2, W2) -> (N, 4*C, H2, W2): pure contiguous reshape, matching
    # torch.cat((LL, HL, LH, HH), dim=1) channel ordering.
    return out.reshape(n, 4 * c, h2, w2)


def _dwt_ref(x):
    """Pure-JAX reference mirroring the PyTorch dwt_init exactly."""
    x01 = x[:, :, 0::2, :] / 2
    x02 = x[:, :, 1::2, :] / 2
    x1 = x01[:, :, :, 0::2]
    x2 = x02[:, :, :, 0::2]
    x3 = x01[:, :, :, 1::2]
    x4 = x02[:, :, :, 1::2]
    x_LL = x1 + x2 + x3 + x4
    x_HL = -x1 - x2 + x3 + x4
    x_LH = -x1 + x2 - x3 + x4
    x_HH = x1 - x2 - x3 + x4
    return jnp.concatenate((x_LL, x_HL, x_LH, x_HH), axis=1)


if __name__ == "__main__":
    key = jax.random.PRNGKey(0)
    N, C, H, W = 2, 4, 16, 16
    x = jax.random.normal(key, (N, C, H, W), dtype=jnp.float32)

    y = jax.block_until_ready(dwt(x))
    y_ref = _dwt_ref(x)
    assert y.shape == (N, 4 * C, H // 2, W // 2), y.shape
    assert y.dtype == x.dtype, y.dtype
    np.testing.assert_allclose(np.asarray(y), np.asarray(y_ref), rtol=1e-5, atol=1e-5)

    # Also exercise the multi-row-tile path (tiny block budget -> T=8, grid=(2, 4)).
    y2 = jax.block_until_ready(dwt(x, block_bytes=1024))
    np.testing.assert_allclose(np.asarray(y2), np.asarray(y_ref), rtol=1e-5, atol=1e-5)

    print("KERNEL_OK")
</pallas_src>

<mosaic_0001>
module attributes {stable_mosaic.version = 11 : i64} {
  func.func @_dwt_kernel(%arg0: i32, %arg1: i32, %arg2: memref<1x32x32xf32, #tpu.memory_space<vmem>>, %arg3: memref<16x16xf32, #tpu.memory_space<vmem>>, %arg4: memref<1x4x32x8xf32, #tpu.memory_space<vmem>>) attributes {dimension_semantics = [#tpu.dimension_semantics<parallel>, #tpu.dimension_semantics<parallel>], iteration_bounds = array<i64: 2, 1>, scalar_prefetch = 0 : i64, scratch_operands = 0 : i64, tpu.core_type = #tpu.core_type<tc>, window_params = [{transform_indices = @transform_0, window_bounds = array<i64: 1, 32, 32>}, {pipeline_mode = #tpu.pipeline_mode<synchronous>, transform_indices = @transform_1, window_bounds = array<i64: 16, 16>}, {transform_indices = @transform_2, window_bounds = array<i64: 1, 4, 32, 8>}]} {
    %c0 = arith.constant 0 : index
    %c0_0 = arith.constant 0 : index
    %c0_1 = arith.constant 0 : index
    %0 = vector.load %arg2[%c0, %c0_0, %c0_1] : memref<1x32x32xf32, #tpu.memory_space<vmem>>, vector<1x32x32xf32>
    %1 = vector.shape_cast %0 : vector<1x32x32xf32> to vector<32x32xf32>
    %c0_2 = arith.constant 0 : index
    %c0_3 = arith.constant 0 : index
    %2 = vector.load %arg3[%c0_2, %c0_3] : memref<16x16xf32, #tpu.memory_space<vmem>>, vector<16x16xf32>
    %3 = vector.extract_strided_slice %1 {offsets = [0, 0], sizes = [32, 16], strides = [1, 1]} : vector<32x32xf32> to vector<32x16xf32>
    %4 = vector.extract_strided_slice %1 {offsets = [0, 16], sizes = [32, 16], strides = [1, 1]} : vector<32x32xf32> to vector<32x16xf32>
    %5 = arith.addf %3, %4 : vector<32x16xf32>
    %6 = arith.subf %4, %3 : vector<32x16xf32>
    %cst = arith.constant dense<0.000000e+00> : vector<32x16xf32>
    %7 = tpu.matmul %5, %2, %cst {dimension_numbers = #tpu.dot_dimension_numbers<[1], [0], [0], [1], [0, 0, 1, 1], [], []>, precision = #tpu.contract_precision<fp32>} : vector<32x16xf32>, vector<16x16xf32>, vector<32x16xf32> -> vector<32x16xf32>
    %cst_4 = arith.constant dense<0.000000e+00> : vector<32x16xf32>
    %8 = tpu.matmul %6, %2, %cst_4 {dimension_numbers = #tpu.dot_dimension_numbers<[1], [0], [0], [1], [0, 0, 1, 1], [], []>, precision = #tpu.contract_precision<fp32>} : vector<32x16xf32>, vector<16x16xf32>, vector<32x16xf32> -> vector<32x16xf32>
    %9 = vector.extract_strided_slice %7 {offsets = [0, 0], sizes = [32, 8], strides = [1, 1]} : vector<32x16xf32> to vector<32x8xf32>
    %10 = vector.extract_strided_slice %7 {offsets = [0, 8], sizes = [32, 8], strides = [1, 1]} : vector<32x16xf32> to vector<32x8xf32>
    %11 = vector.extract_strided_slice %8 {offsets = [0, 0], sizes = [32, 8], strides = [1, 1]} : vector<32x16xf32> to vector<32x8xf32>
    %12 = vector.extract_strided_slice %8 {offsets = [0, 8], sizes = [32, 8], strides = [1, 1]} : vector<32x16xf32> to vector<32x8xf32>
    %c0_5 = arith.constant 0 : index
    %c0_6 = arith.constant 0 : index
    %c0_7 = arith.constant 0 : index
    %c0_8 = arith.constant 0 : index
    %13 = vector.load %arg4[%c0_5, %c0_6, %c0_7, %c0_8] : memref<1x4x32x8xf32, #tpu.memory_space<vmem>>, vector<1x1x32x8xf32>
    %14 = vector.shape_cast %13 : vector<1x1x32x8xf32> to vector<32x8xf32>
    %15 = vector.shape_cast %9 : vector<32x8xf32> to vector<1x1x32x8xf32>
    tpu.vector_store %arg4[%c0_5, %c0_6, %c0_7, %c0_8], %15 {strides = array<i32>} : memref<1x4x32x8xf32, #tpu.memory_space<vmem>>, vector<1x1x32x8xf32>,
    %c0_9 = arith.constant 0 : index
    %c1 = arith.constant 1 : index
    %c0_10 = arith.constant 0 : index
    %c0_11 = arith.constant 0 : index
    %16 = vector.load %arg4[%c0_9, %c1, %c0_10, %c0_11] : memref<1x4x32x8xf32, #tpu.memory_space<vmem>>, vector<1x1x32x8xf32>
    %17 = vector.shape_cast %16 : vector<1x1x32x8xf32> to vector<32x8xf32>
    %18 = vector.shape_cast %10 : vector<32x8xf32> to vector<1x1x32x8xf32>
    tpu.vector_store %arg4[%c0_9, %c1, %c0_10, %c0_11], %18 {strides = array<i32>} : memref<1x4x32x8xf32, #tpu.memory_space<vmem>>, vector<1x1x32x8xf32>,
    %c0_12 = arith.constant 0 : index
    %c2 = arith.constant 2 : index
    %c0_13 = arith.constant 0 : index
    %c0_14 = arith.constant 0 : index
    %19 = vector.load %arg4[%c0_12, %c2, %c0_13, %c0_14] : memref<1x4x32x8xf32, #tpu.memory_space<vmem>>, vector<1x1x32x8xf32>
    %20 = vector.shape_cast %19 : vector<1x1x32x8xf32> to vector<32x8xf32>
    %21 = vector.shape_cast %11 : vector<32x8xf32> to vector<1x1x32x8xf32>
    tpu.vector_store %arg4[%c0_12, %c2, %c0_13, %c0_14], %21 {strides = array<i32>} : memref<1x4x32x8xf32, #tpu.memory_space<vmem>>, vector<1x1x32x8xf32>,
    %c0_15 = arith.constant 0 : index
    %c3 = arith.constant 3 : index
    %c0_16 = arith.constant 0 : index
    %c0_17 = arith.constant 0 : index
    %22 = vector.load %arg4[%c0_15, %c3, %c0_16, %c0_17] : memref<1x4x32x8xf32, #tpu.memory_space<vmem>>, vector<1x1x32x8xf32>
    %23 = vector.shape_cast %22 : vector<1x1x32x8xf32> to vector<32x8xf32>
    %24 = vector.shape_cast %12 : vector<32x8xf32> to vector<1x1x32x8xf32>
    tpu.vector_store %arg4[%c0_15, %c3, %c0_16, %c0_17], %24 {strides = array<i32>} : memref<1x4x32x8xf32, #tpu.memory_space<vmem>>, vector<1x1x32x8xf32>,
    return
  }
  func.func @transform_0(%arg0: i32, %arg1: i32) -> (i32, i32, i32) {
    %c0_i32 = arith.constant 0 : i32
    %c0_i32_0 = arith.constant 0 : i32
    return %arg0, %arg1, %c0_i32 : i32, i32, i32
  }
  func.func @transform_1(%arg0: i32, %arg1: i32) -> (i32, i32) {
    %c0_i32 = arith.constant 0 : i32
    %c0_i32_0 = arith.constant 0 : i32
    %c0_i32_1 = arith.constant 0 : i32
    return %c0_i32, %c0_i32_0 : i32, i32
  }
  func.func @transform_2(%arg0: i32, %arg1: i32) -> (i32, i32, i32, i32) {
    %c0_i32 = arith.constant 0 : i32
    %c0_i32_0 = arith.constant 0 : i32
    %c0_i32_1 = arith.constant 0 : i32
    return %arg0, %c0_i32, %arg1, %c0_i32_0 : i32, i32, i32, i32
  }
}

</mosaic_0001>

<bundles_post_ra>
// kernel: tpu_custom_call.1
= control target key start
LH: loop header
LB: loop body
LE: loop exit
PB: predicated region body
PF: predicated region fallthrough
CT: control target
= control target key end

     0   :  { %7 = vsyncpa [#allocation3], 0  ;;  %s1395_s0 = inlined_call_operand.hbm [shape: f32[2,32,32], index: 0, kind: input, shape index: {}]   ;;  %s1396_s1 = inlined_call_operand.hbm [shape: f32[16,16], index: 1, kind: input, shape index: {}]   ;;  %s1397_s2 = inlined_call_operand.vmem [shape: f32[2,4,32,8], index: 2, kind: output, shape index: {}]  }
   0x1   :  { %9 = vsyncpa [#allocation3 + $0x1], 0 }
   0x2   :  { %10 = vsyncpa [#allocation5], 0  ;;  %s1184_s9 = smov 0   ;;  %s1186_s10 = smov 0  }
   0x3   :  { %s1188_s11 = smov 0   ;;  %s1190_s12 = smov 0  }
   0x4   :  { %s1192_s13 = smov 0   ;;  %s1194_s14 = smov 0  }
   0x5 LB: > { %s947_s15 = sadd.s32 4294967295, %s1161_s14   ;;  %p50_p0 = scmp.ne.s32.totalorder %s1145_s10, %s1141_s9  ;;  %s1161_s14 = sphi %s1194_s14, %s16_s14   ;;  %s1157_s13 = sphi %s1192_s13, %s1406_s13   ;;  %s1153_s12 = sphi %s1190_s12, %s1405_s12   ;;  %s1149_s11 = sphi %s1188_s11, %s1404_s11   ;;  %s1145_s10 = sphi %s1186_s10, %s1403_s10   ;;  %s1141_s9 = sphi %s1184_s9, %s1402_s9  }
   0x6   : > { %p1214_p1 = scmp.eq.s32.totalorder %s947_s15, 0  ;;  %p949_p2 = scmp.ge.s32.totalorder %s1161_s14, 1 }
   0x7   : > { %p110_p3 = scmp.lt.s32.totalorder %s1161_s14, 3  ;;  %s121_s20 = sshll.u32 %s1396_s1, 4  ;;  %s122_s20 = int_to_ptr.hbm [resolvable:$true] %s121_s20 }
   0x8   : > { %p1222_p4 = por %p1214_p1, %p50_p0  ;;  %s1163_s22 = smov [#allocation4]  }
   0x9   : > { %p1229_p5 = pnand %p949_p2, %p110_p3  ;;  %s123_s23 = sshll.u32 %s1163_s22, 4  ;;  %s124_s23 = int_to_ptr.vmem [resolvable:$true] %s123_s23 }
   0xa   : > { %s1164_s24 = smov 128   ;;  %s1165_s25 = smov 8  }
   0xb   : > { %p982_p6 = pneg %p1229_p5  ;;  %s28_s26 = sadd.s32 1, %s1157_s13 }
   0xc   : > { %p30_p8 = scmp.ge.s32.totalorder %s28_s26, 2  ;;  %p44_p9 = scmp.ne.s32.totalorder %s1149_s11, %s1145_s10 }
   0xd   : > { %p983_p7 = pnand %p982_p6, %p1214_p1  ;;  %p45_p10 = scmp.eq.s32.totalorder %s1161_s14, 0 }
   0xe   : > { %s1408_s26 = smov (%p30_p8, %s28_s26), 0  ;;  %s37_s27 = sadd.s32 1, %s1149_s11 }
   0xf   : > { %985 = dma.hbm_to_vmem [thread:$0]  (!%p983_p7), %s122_s20, 256, %s124_s23, [#allocation5], %s1164_s24, %s1164_s24, %s1165_s25  }
  0x10   : > { %p1244_p11 = por %p45_p10, %p44_p9  ;;  %s32_s29 = ssub.s32 %s1157_s13, %s1408_s26 }
  0x11   : > { %s137_s30 = sand.u32 1, %s1149_s11   ;;  %p35_p12 = scmp.eq.s32.totalorder %s32_s29, 0 }
  0x12   : > { %p991_p13 = scmp.lt.s32.totalorder %s1161_s14, 2  ;;  %s952_s3 = sshll.u32 %s137_s30, 5 }
  0x13   : > { %s974_s4 = sshll.u32 %s1157_s13, 5  ;;  %s141_s15 = scalar_lea.vmem [#allocation2], %s952_s3 }
  0x14   : > { %s1254_s5 = scalar_select %p35_p12, %s1149_s11, %s37_s27  }
  0x15   : > { %s148_s8 = scalar_lea.hbm %s1395_s0, %s974_s4  ;;  %s151_s18 = sshll.u32 %s141_s15, 4  ;;  %s152_s18 = int_to_ptr.vmem [resolvable:$true] %s151_s18 }
  0x16   : > { %s149_s9 = sshll.u32 %s148_s8, 4  ;;  %p987_p0 = pnand %p991_p13, %p1244_p11  ;;  %s150_s9 = int_to_ptr.hbm [resolvable:$true] %s149_s9 }
  0x17   : > { %s138_s19 = scalar_lea.sflag [#allocation3], %s137_s30  ;;  %163 = sbr.rel (%p1229_p5) target bundleno = 583 (0x247), region = 28 }
  0x18   : > { %989 = dma.hbm_to_vmem [thread:$0]  (!%p987_p0), %s150_s9, 512, %s152_s18, %s138_s19, %s1164_s24, %s1164_s24, %s1165_s25  }
  0x19   : > { %s165_s20 = sand.u32 (!%p1229_p5), 1, %s1145_s10  }
  0x1a   : > { %s956_s22 = sshll.u32 (!%p1229_p5), %s165_s20, 5  ;;  %s166_s23 = scalar_lea.sflag (!%p1229_p5), [#allocation3], %s165_s20 }
  0x1b   : > { %s169_s27 = scalar_lea.vmem (!%p1229_p5), [#allocation2], %s956_s22 }
  0x1c   : > { %1132 = dma.done.wait (%p1222_p4), %s166_s23, 512  }
  0x1d   : > { %1134 = vsyncadd (%p1222_p4), %s166_s23, 4294966784 }
  0x1e   : > { %1136 = dma.done.wait (%p1214_p1), [#allocation5], 256  }
  0x1f   : > { %1138 = vsyncadd (%p1214_p1), [#allocation5], 4294967040  ;;  %v211_v0 = vld [vmem:[%s169_s27] sm:$0xff]  ;;  %s1166_s21 = smov 112   ;;  %s1167_s24 = smov 16   ;;  %v1273_v1 = vld [vmem:[%s169_s27 + $0x8] sm:$0xff] }
  0x20   : > { %221 = vrot.lane.b32.xlu1 %v211_v0, %s1166_s21  ;;  %237 = vrot.lane.b32.xlu0 %v211_v0, %s1167_s24  ;;  %v1277_v2 = vld [vmem:[%s169_s27 + $0x10] sm:$0xff]  ;;  %v1281_v3 = vld [vmem:[%s169_s27 + $0x18] sm:$0xff]  ;;  %v216_v4 = vld [vmem:[#allocation4 + $0x8] sm:$0xff]  ;;  %vm253_vm0 = vcmask 130048   ;;  %p202_p1 = scmp.lt.s32.totalorder %s1153_s12, 1  ;;  %vm790_vm1 = vcmask 64512  }
  0x21   : > { %223 = vrot.lane.b32.xlu2 %v1273_v1, %s1166_s21  ;;  %v280_v5 = vand.u32 4294901760, %v216_v4  ;;  %v215_v6 = vld [vmem:[#allocation4] sm:$0xff]  ;;  %s1168_s29 = smov 120  }
  0x22   : > { %v282_v8 = vand.u32 4294901760, %v215_v6  ;;  %s1410_s12 = smov (!%p202_p1, %s1153_s12), 1 }
  0x23   : > { %v1288_v7 = vsub.f32 %v216_v4, %v280_v5  ;;  %416 = vmatpush.msra.mxu3 %v280_v5  ;;  %281 = vmatpush.msra.mxu0 %v280_v5  ;;  %s975_s16 = sshll.u32 %s1410_s12, 7 }
  0x24   : > { %v1291_v10 = vsub.f32 %v215_v6, %v282_v8  ;;  %s1333_s28 = scalar_lea.vmem %s1397_s2, %s975_s16 }
  0x25   : > { %v333_v9 = vand.u32 4294901760, %v1288_v7  ;;  %376 = vmatpush.msra.mxu2 %v1288_v7  ;;  %418 = vmatpush.msra.mxu3 %v282_v8 }
  0x26   : > { %283 = vmatpush.msra.mxu0 %v282_v8  ;;  %v339_v12 = vand.u32 4294901760, %v1291_v10 }
  0x27   : > { %v334_v11 = vsub.f32 %v1288_v7, %v333_v9  ;;  %379 = vmatpush.msra.mxu2 %v1291_v10 }
  0x28   : > { %239 = vrot.lane.b32.xlu0 %v1273_v1, %s1167_s24  ;;  %241 = vrot.lane.b32.xlu1 %v1277_v2, %s1167_s24  ;;  %v340_v14 = vsub.f32 %v1291_v10, %v339_v12 }
  0x29   : > { %243 = vrot.lane.b32.xlu2 %v1281_v3, %s1167_s24  ;;  %461 = vmatpush.msrb.mxu0 %v333_v9  ;;  %v335_v13 = vand.u32 4294901760, %v334_v11 }
  0x2a   : > { %553 = vmatpush.msrb.mxu2 %v280_v5  ;;  %v341_v15 = vand.u32 4294901760, %v340_v14 }
  0x2b   : > { %465 = vmatpush.msrb.mxu0 %v339_v12  ;;  %336 = vmatpush.msra.mxu1 %v335_v13 }
  0x2c   : > { %555 = vmatpush.msrb.mxu2 %v282_v8  ;;  %608 = vmatpush.msrb.mxu3 %v335_v13 }
  0x2d   : > { %342 = vmatpush.msra.mxu1 %v341_v15 }
  0x2e   : > { %614 = vmatpush.msrb.mxu3 %v341_v15 }
  0x2f   : > { %498 = vmatpush.msrb.mxu1 %v280_v5 }
  0x30   : > { %225 = vrot.lane.b32.xlu0 %v1277_v2, %s1166_s21  ;;  %227 = vrot.lane.b32.xlu1 %v1281_v3, %s1166_s21 }
  0x31   : > { %500 = vmatpush.msrb.mxu1 %v282_v8 }
  0x7b   : > { %v224_v16 = vpop.permute.xlu2 %223 }
  0x7c   : > { %v234_v17 = vadd.f32 %v224_v16, %v1273_v1 }
  0x7e   : > { %v258_v18 = vsel %vm253_vm0, %v234_v17, 0 }
  0x7f   : > { %v1300_v23 = vand.u32 4294901760, %v258_v18 }
  0x81   : > { %v293_v27 = vsub.f32 %v258_v18, %v1300_v23 }
  0x83   : > { %v244_v28 = vpop.permute.xlu2 %243  ;;  %v294_v36 = vand.u32 4294901760, %v293_v27 }
  0x84   : > { %v252_v32 = vsub.f32 %v1281_v3, %v244_v28 }
  0x85   : > { %v295_v38 = vsub.f32 %v293_v27, %v294_v36 }
  0x87   : > { %v296_v43 = vand.u32 4294901760, %v295_v38 }
  0x92   : > { %v222_v19 = vpop.permute.xlu1 %221  ;;  %v238_v20 = vpop.permute.xlu0 %237 }
  0x93   : > { %v233_v21 = vadd.f32 %v222_v19, %v211_v0  ;;  %v249_v22 = vsub.f32 %v211_v0, %v238_v20 }
  0x95   : > { %v255_v24 = vsel %vm253_vm0, %v233_v21, 0  ;;  %522 = vrot.lane.b32.xlu2 %v249_v22, %s1166_s21 }
  0x96   : > { %v284_v25 = vand.u32 4294901760, %v255_v24 }
  0x98   : > { %v285_v26 = vsub.f32 %v255_v24, %v284_v25  ;;  %344 = vmatmul.f32.vlgmr.msra.gmra.mxu1 %v284_v25 }
  0x99   : > { %688 = vmatpush.msra.mxu1 %v280_v5 }
  0x9a   : > { %v240_v29 = vpop.permute.xlu0 %239  ;;  %382 = vmatmul.f32.vlgmr.msra.gmra.mxu2 %v285_v26  ;;  %v286_v30 = vand.u32 4294901760, %v285_v26  ;;  %v242_v31 = vpop.permute.xlu1 %241 }
  0x9b   : > { %v250_v33 = vsub.f32 %v1273_v1, %v240_v29  ;;  %v251_v34 = vsub.f32 %v1277_v2, %v242_v31  ;;  %690 = vmatpush.msra.mxu1 %v282_v8  ;;  %733 = vmatpush.msra.mxu2 %v333_v9 }
  0x9c   : > { %422 = vmatmul.f32.vlgmr.msra.gmra.mxu3 %v286_v30  ;;  %v287_v35 = vsub.f32 %v285_v26, %v286_v30 }
  0x9d   : > { %524 = vrot.lane.b32.xlu0 %v250_v33, %s1166_s21  ;;  %526 = vrot.lane.b32.xlu1 %v251_v34, %s1166_s21 }
  0x9e   : > { %v288_v37 = vand.u32 4294901760, %v287_v35  ;;  %528 = vrot.lane.b32.xlu2 %v252_v32, %s1166_s21  ;;  %770 = vmatpush.msra.mxu3 %v280_v5 }
  0x9f   : > { %737 = vmatpush.msra.mxu2 %v339_v12 }
  0xa0   : > { %289 = vmatmul.f32.vlgmr.msra.gmra.mxu0 %v288_v37  ;;  %348 = vmatmul.f32.gmra.mxu1 %v1300_v23 }
  0xa1   : > { %648 = vmatpush.msra.mxu0 %v1288_v7  ;;  %772 = vmatpush.msra.mxu3 %v282_v8 }
  0xa2   : > { %v226_v39 = vpop.permute.xlu0 %225  ;;  %v228_v40 = vpop.permute.xlu1 %227  ;;  %387 = vmatmul.f32.gmra.mxu2 %v293_v27 }
  0xa3   : > { %v235_v41 = vadd.f32 %v226_v39, %v1277_v2  ;;  %v236_v42 = vadd.f32 %v228_v40, %v1281_v3  ;;  %651 = vmatpush.msra.mxu0 %v1291_v10 }
  0xa4   : > { %428 = vmatmul.f32.gmra.mxu3 %v294_v36 }
  0xa5   : > { %v261_v44 = vsel %vm253_vm0, %v235_v41, 0  ;;  %v264_v45 = vsel %vm253_vm0, %v236_v42, 0 }
  0xa6   : > { %v300_v46 = vand.u32 4294901760, %v261_v44  ;;  %v308_v47 = vand.u32 4294901760, %v264_v45 }
  0xa8   : > { %v301_v48 = vsub.f32 %v261_v44, %v300_v46  ;;  %297 = vmatmul.f32.gmra.mxu0 %v296_v43  ;;  %352 = vmatmul.f32.gmra.mxu1 %v300_v46  ;;  %v309_v49 = vsub.f32 %v264_v45, %v308_v47 }
  0xaa   : > { %v302_v50 = vand.u32 4294901760, %v301_v48  ;;  %392 = vmatmul.f32.gmra.mxu2 %v301_v48  ;;  %v310_v52 = vand.u32 4294901760, %v309_v49 }
  0xac   : > { %v303_v51 = vsub.f32 %v301_v48, %v302_v50  ;;  %434 = vmatmul.f32.gmra.mxu3 %v302_v50  ;;  %v311_v54 = vsub.f32 %v309_v49, %v310_v52 }
  0xae   : > { %v304_v53 = vand.u32 4294901760, %v303_v51  ;;  %v312_v55 = vand.u32 4294901760, %v311_v54 }
  0xb0   : > { %305 = vmatmul.f32.gmra.mxu0 %v304_v53  ;;  %356 = vmatmul.f32.gmra.mxu1 %v308_v47 }
  0xb2   : > { %397 = vmatmul.f32.gmra.mxu2 %v309_v49 }
  0xb4   : > { %440 = vmatmul.f32.gmra.mxu3 %v310_v52 }
  0xb8   : > { %313 = vmatmul.f32.gmra.mxu0 %v312_v55  ;;  %502 = vmatmul.f32.vlgmr.msrb.gmra.mxu1 %v284_v25 }
  0xc0   : > { %467 = vmatmul.f32.vlgmr.msrb.gmra.mxu0 %v284_v25  ;;  %506 = vmatmul.f32.gmra.mxu1 %v1300_v23 }
  0xc8   : > { %471 = vmatmul.f32.gmra.mxu0 %v1300_v23  ;;  %510 = vmatmul.f32.gmra.mxu1 %v300_v46 }
  0xd0   : > { %475 = vmatmul.f32.gmra.mxu0 %v300_v46  ;;  %514 = vmatmul.f32.gmra.mxu1 %v308_v47 }
  0xd8   : > { %479 = vmatmul.f32.gmra.mxu0 %v308_v47 }
  0xef   : > { %v523_v56 = vpop.permute.xlu2 %522 }
  0xf0   : > { %v530_v57 = vsel %vm253_vm0, %v523_v56, 0 }
  0xf1   : > { %v556_v58 = vand.u32 4294901760, %v530_v57 }
  0xf3   : > { %v557_v59 = vsub.f32 %v530_v57, %v556_v58  ;;  %616 = vmatmul.f32.vlgmr.msrb.gmra.mxu3 %v556_v58 }
  0xf5   : > { %v558_v60 = vand.u32 4294901760, %v557_v59  ;;  %654 = vmatmul.f32.vlgmr.msra.gmra.mxu0 %v557_v59 }
  0xf7   : > { %694 = vmatmul.f32.vlgmr.msra.gmra.mxu1 %v558_v60  ;;  %v559_v61 = vsub.f32 %v557_v59, %v558_v60 }
  0xf8   : > { %v529_v6 = vpop.permute.xlu2 %528 }
  0xf9   : > { %v560_v62 = vand.u32 4294901760, %v559_v61  ;;  %v536_v10 = vsel %vm253_vm0, %v529_v6, 0 }
  0xfa   : > { %v1324_v12 = vand.u32 4294901760, %v536_v10 }
  0xfb   : > { %561 = vmatmul.f32.vlgmr.msrb.gmra.mxu2 %v560_v62 }
  0xfc   : > { %v581_v15 = vsub.f32 %v536_v10, %v1324_v12 }
  0xfe   : > { %v582_v20 = vand.u32 4294901760, %v581_v15 }
 0x100   : > { %v583_v22 = vsub.f32 %v581_v15, %v582_v20 }
 0x102   : > { %v584_v24 = vand.u32 4294901760, %v583_v22 }
 0x10f   : > { %v525_v63 = vpop.permute.xlu0 %524  ;;  %v527_v0 = vpop.permute.xlu1 %526 }
 0x110   : > { %v532_v1 = vsel %vm253_vm0, %v525_v63, 0  ;;  %v534_v2 = vsel %vm253_vm0, %v527_v0, 0 }
 0x111   : > { %v564_v3 = vand.u32 4294901760, %v532_v1  ;;  %v572_v4 = vand.u32 4294901760, %v534_v2 }
 0x113   : > { %v565_v5 = vsub.f32 %v532_v1, %v564_v3  ;;  %620 = vmatmul.f32.gmra.mxu3 %v564_v3  ;;  %v573_v7 = vsub.f32 %v534_v2, %v572_v4 }
 0x115   : > { %v345_v8 = vpop.f32.mrf.mxu1  ;;  %659 = vmatmul.f32.gmra.mxu0 %v565_v5  ;;  %v566_v9 = vand.u32 4294901760, %v565_v5  ;;  %v574_v14 = vand.u32 4294901760, %v573_v7 }
 0x117   : > { %700 = vmatmul.f32.gmra.mxu1 %v566_v9  ;;  %v567_v11 = vsub.f32 %v565_v5, %v566_v9  ;;  %v575_v17 = vsub.f32 %v573_v7, %v574_v14 }
 0x119   : > { %v568_v13 = vand.u32 4294901760, %v567_v11  ;;  %v576_v19 = vand.u32 4294901760, %v575_v17 }
 0x11b   : > { %569 = vmatmul.f32.gmra.mxu2 %v568_v13  ;;  %624 = vmatmul.f32.gmra.mxu3 %v572_v4 }
 0x11d   : > { %v290_v16 = vpop.f32.mrf.mxu0  ;;  %664 = vmatmul.f32.gmra.mxu0 %v573_v7  ;;  %v349_v18 = vpop.f32.mrf.mxu1 }
 0x11e   : > { %v346_v27 = vadd.f32 %v345_v8, %v290_v16  ;;  %v383_v28 = vpop.f32.mrf.mxu2 }
 0x11f   : > { %706 = vmatmul.f32.gmra.mxu1 %v574_v14  ;;  %v423_v31 = vpop.f32.mrf.mxu3 }
 0x120   : > { %v384_v30 = vadd.f32 %v383_v28, %v346_v27 }
 0x122   : > { %v424_v32 = vadd.f32 %v423_v31, %v384_v30 }
 0x123   : > { %577 = vmatmul.f32.gmra.mxu2 %v576_v19  ;;  %628 = vmatmul.f32.gmra.mxu3 %v1324_v12 }
 0x125   : > { %v298_v21 = vpop.f32.mrf.mxu0  ;;  %669 = vmatmul.f32.gmra.mxu0 %v581_v15  ;;  %v353_v23 = vpop.f32.mrf.mxu1 }
 0x126   : > { %v350_v33 = vadd.f32 %v349_v18, %v298_v21  ;;  %v388_v34 = vpop.f32.mrf.mxu2 }
 0x127   : > { %712 = vmatmul.f32.gmra.mxu1 %v582_v20  ;;  %v429_v40 = vpop.f32.mrf.mxu3 }
 0x128   : > { %v389_v39 = vadd.f32 %v388_v34, %v350_v33 }
 0x12a   : > { %v430_v41 = vadd.f32 %v429_v40, %v389_v39 }
 0x12b   : > { %585 = vmatmul.f32.gmra.mxu2 %v584_v24  ;;  %774 = vmatmul.f32.vlgmr.msra.gmra.mxu3 %v556_v58 }
 0x12d   : > { %v306_v25 = vpop.f32.mrf.mxu0  ;;  %v357_v26 = vpop.f32.mrf.mxu1 }
 0x12e   : > { %v354_v43 = vadd.f32 %v353_v23, %v306_v25  ;;  %v393_v47 = vpop.f32.mrf.mxu2 }
 0x12f   : > { %v435_v49 = vpop.f32.mrf.mxu3 }
 0x130   : > { %v394_v48 = vadd.f32 %v393_v47, %v354_v43 }
 0x132   : > { %v436_v50 = vadd.f32 %v435_v49, %v394_v48 }
 0x133   : > { %739 = vmatmul.f32.vlgmr.msra.gmra.mxu2 %v556_v58  ;;  %778 = vmatmul.f32.gmra.mxu3 %v564_v3 }
 0x135   : > { %v314_v29 = vpop.f32.mrf.mxu0  ;;  %v503_v35 = vpop.f32.mrf.mxu1 }
 0x136   : > { %v358_v51 = vadd.f32 %v357_v26, %v314_v29  ;;  %v398_v54 = vpop.f32.mrf.mxu2 }
 0x137   : > { %v441_v58 = vpop.f32.mrf.mxu3 }
 0x138   : > { %v399_v56 = vadd.f32 %v398_v54, %v358_v51 }
 0x13a   : > { %v442_v59 = vadd.f32 %v441_v58, %v399_v56 }
 0x13b   : > { %743 = vmatmul.f32.gmra.mxu2 %v564_v3  ;;  %782 = vmatmul.f32.gmra.mxu3 %v572_v4 }
 0x13d   : > { %v468_v36 = vpop.f32.mrf.mxu0  ;;  %v507_v45 = vpop.f32.mrf.mxu1 }
 0x13e   : > { %v469_v37 = vadd.f32 %v468_v36, %v424_v32 }
 0x140   : > { %v504_v38 = vadd.f32 %v503_v35, %v469_v37 }
 0x142   : > { %791 = vst.msk [vmem:[%s1333_s28] sm:$0xff] %vm790_vm1, %v504_v38  ;;  %799 = vrot.lane.b32.xlu0 %v504_v38, %s1168_s29 }
 0x143   : > { %747 = vmatmul.f32.gmra.mxu2 %v572_v4  ;;  %786 = vmatmul.f32.gmra.mxu3 %v1324_v12 }
 0x145   : > { %v472_v42 = vpop.f32.mrf.mxu0  ;;  %v511_v55 = vpop.f32.mrf.mxu1 }
 0x146   : > { %v473_v44 = vadd.f32 %v472_v42, %v430_v41 }
 0x148   : > { %v508_v46 = vadd.f32 %v507_v45, %v473_v44 }
 0x14a   : > { %792 = vst.msk [vmem:[%s1333_s28 + $0x8] sm:$0xff] %vm790_vm1, %v508_v46  ;;  %801 = vrot.lane.b32.xlu1 %v508_v46, %s1168_s29 }
 0x14b   : > { %751 = vmatmul.f32.gmra.mxu2 %v1324_v12 }
 0x14d   : > { %v476_v52 = vpop.f32.mrf.mxu0  ;;  %v515_v62 = vpop.f32.mrf.mxu1 }
 0x14e   : > { %v477_v53 = vadd.f32 %v476_v52, %v436_v50 }
 0x150   : > { %v512_v57 = vadd.f32 %v511_v55, %v477_v53 }
 0x152   : > { %803 = vrot.lane.b32.xlu2 %v512_v57, %s1168_s29  ;;  %793 = vst.msk [vmem:[%s1333_s28 + $0x10] sm:$0xff] %vm790_vm1, %v512_v57 }
 0x155   : > { %v480_v60 = vpop.f32.mrf.mxu0 }
 0x156   : > { %v481_v61 = vadd.f32 %v480_v60, %v442_v59 }
 0x158   : > { %v516_v63 = vadd.f32 %v515_v62, %v481_v61 }
 0x15a   : > { %805 = vrot.lane.b32.xlu0 %v516_v63, %s1168_s29  ;;  %794 = vst.msk [vmem:[%s1333_s28 + $0x18] sm:$0xff] %vm790_vm1, %v516_v63 }
 0x172   : > { %v655_v7 = vpop.f32.mrf.mxu0 }
 0x174   : > { %v695_v10 = vpop.f32.mrf.mxu1 }
 0x176   : > { %v617_v0 = vpop.f32.mrf.mxu3 }
 0x17e   : > { %v562_v1 = vpop.f32.mrf.mxu2 }
 0x17f   : > { %v618_v8 = vadd.f32 %v617_v0, %v562_v1 }
 0x181   : > { %v656_v11 = vadd.f32 %v655_v7, %v618_v8 }
 0x183   : > { %v696_v17 = vadd.f32 %v695_v10, %v656_v11 }
 0x192   : > { %v660_v14 = vpop.f32.mrf.mxu0 }
 0x194   : > { %v701_v20 = vpop.f32.mrf.mxu1 }
 0x196   : > { %v621_v2 = vpop.f32.mrf.mxu3 }
 0x19a   : > { %v665_v27 = vpop.f32.mrf.mxu0 }
 0x19c   : > { %v707_v32 = vpop.f32.mrf.mxu1 }
 0x19e   : > { %v570_v3 = vpop.f32.mrf.mxu2  ;;  %v625_v4 = vpop.f32.mrf.mxu3 }
 0x19f   : > { %v622_v16 = vadd.f32 %v621_v2, %v570_v3 }
 0x1a1   : > { %v661_v21 = vadd.f32 %v660_v14, %v622_v16 }
 0x1a2   : > { %v670_v38 = vpop.f32.mrf.mxu0 }
 0x1a3   : > { %v702_v26 = vadd.f32 %v701_v20, %v661_v21 }
 0x1a4   : > { %v713_v41 = vpop.f32.mrf.mxu1 }
 0x1a6   : > { %v578_v5 = vpop.f32.mrf.mxu2  ;;  %v629_v6 = vpop.f32.mrf.mxu3 }
 0x1a7   : > { %v626_v25 = vadd.f32 %v625_v4, %v578_v5 }
 0x1a9   : > { %v666_v30 = vadd.f32 %v665_v27, %v626_v25 }
 0x1ab   : > { %v708_v34 = vadd.f32 %v707_v32, %v666_v30 }
 0x1ac   : > { %v804_v13 = vpop.permute.xlu2 %803 }
 0x1ad   : > { %962 = vst.msk [vmem:[%s1333_s28 + $0x30] sm:$0xff] %vm790_vm1, %v804_v13 }
 0x1ae   : > { %v586_v9 = vpop.f32.mrf.mxu2  ;;  %v775_v12 = vpop.f32.mrf.mxu3 }
 0x1af   : > { %v630_v33 = vadd.f32 %v629_v6, %v586_v9 }
 0x1b1   : > { %v671_v39 = vadd.f32 %v670_v38, %v630_v33 }
 0x1b3   : > { %v714_v42 = vadd.f32 %v713_v41, %v671_v39 }
 0x1b4   : > { %v800_v15 = vpop.permute.xlu0 %799 }
 0x1b5   : > { %960 = vst.msk [vmem:[%s1333_s28 + $0x20] sm:$0xff] %vm790_vm1, %v800_v15 }
 0x1b6   : > { %v740_v18 = vpop.f32.mrf.mxu2  ;;  %v779_v23 = vpop.f32.mrf.mxu3 }
 0x1b7   : > { %v741_v19 = vadd.f32 %v740_v18, %v696_v17 }
 0x1b9   : > { %v776_v22 = vadd.f32 %v775_v12, %v741_v19 }
 0x1bb   : > { %964 = vst.msk [vmem:[%s1333_s28 + $0x40] sm:$0xff] %vm790_vm1, %v776_v22  ;;  %825 = vrot.lane.b32.xlu1 %v776_v22, %s1168_s29 }
 0x1bc   : > { %v802_v24 = vpop.permute.xlu1 %801 }
 0x1bd   : > { %961 = vst.msk [vmem:[%s1333_s28 + $0x28] sm:$0xff] %vm790_vm1, %v802_v24 }
 0x1be   : > { %v744_v28 = vpop.f32.mrf.mxu2  ;;  %v783_v35 = vpop.f32.mrf.mxu3 }
 0x1bf   : > { %v745_v29 = vadd.f32 %v744_v28, %v702_v26 }
 0x1c1   : > { %v780_v31 = vadd.f32 %v779_v23, %v745_v29 }
 0x1c3   : > { %965 = vst.msk [vmem:[%s1333_s28 + $0x48] sm:$0xff] %vm790_vm1, %v780_v31  ;;  %827 = vrot.lane.b32.xlu2 %v780_v31, %s1168_s29 }
 0x1c6   : > { %v748_v36 = vpop.f32.mrf.mxu2  ;;  %v787_v45 = vpop.f32.mrf.mxu3 }
 0x1c7   : > { %v749_v37 = vadd.f32 %v748_v36, %v708_v34 }
 0x1c9   : > { %v784_v40 = vadd.f32 %v783_v35, %v749_v37 }
 0x1cb   : > { %966 = vst.msk [vmem:[%s1333_s28 + $0x50] sm:$0xff] %vm790_vm1, %v784_v40  ;;  %829 = vrot.lane.b32.xlu0 %v784_v40, %s1168_s29 }
 0x1cc   : > { %v806_v47 = vpop.permute.xlu0 %805 }
 0x1cd   : > { %963 = vst.msk [vmem:[%s1333_s28 + $0x38] sm:$0xff] %vm790_vm1, %v806_v47 }
 0x1ce   : > { %v752_v43 = vpop.f32.mrf.mxu2 }
 0x1cf   : > { %v753_v44 = vadd.f32 %v752_v43, %v714_v42 }
 0x1d1   : > { %v788_v46 = vadd.f32 %v787_v45, %v753_v44 }
 0x1d3   : > { %967 = vst.msk [vmem:[%s1333_s28 + $0x58] sm:$0xff] %vm790_vm1, %v788_v46  ;;  %831 = vrot.lane.b32.xlu1 %v788_v46, %s1168_s29 }
 0x21d   : > { %v828_v48 = vpop.permute.xlu2 %827 }
 0x21e   : > { %969 = vst.msk [vmem:[%s1333_s28 + $0x68] sm:$0xff] %vm790_vm1, %v828_v48 }
 0x22d   : > { %v826_v49 = vpop.permute.xlu1 %825 }
 0x22e   : > { %968 = vst.msk [vmem:[%s1333_s28 + $0x60] sm:$0xff] %vm790_vm1, %v826_v49 }
 0x23d   : > { %v830_v50 = vpop.permute.xlu0 %829 }
 0x23e   : > { %970 = vst.msk [vmem:[%s1333_s28 + $0x70] sm:$0xff] %vm790_vm1, %v830_v50 }
 0x245   : > { %v832_v51 = vpop.permute.xlu1 %831 }
 0x246   : > { %971 = vst.msk [vmem:[%s1333_s28 + $0x78] sm:$0xff] %vm790_vm1, %v832_v51 }
 0x247 PF: > { %s16_s14 = sadd.s32 1, %s1161_s14   ;;  %s1402_s9 = smov %s1145_s10 }
 0x248   : > { %p13_p2 = scmp.ge.s32.totalorder %s16_s14, 4   ;;  %s1403_s10 = smov %s1149_s11 }
 0x249   : > { %s1404_s11 = smov %s1254_s5  ;;  %s1405_s12 = smov %s1157_s13 }
 0x24a   : > { %s1406_s13 = smov %s1408_s26  ;;  %15 = sbr.rel (!%p13_p2) target bundleno = 5 (0x5), region = 75 }
 0x24f   :  { %872 = vsyncpa [#allocation3], 1 }
 0x250   :  { %874 = vsyncpa [#allocation3 + $0x1], 1 }
 0x251   :  { %875 = vsyncpa [#allocation5], 1 }

</bundles_post_ra>
